<compile_context>
chip_gen: v7x
topology: tpu7x:2x2x1
jax: 0.10.0
libtpu: 0.0.40
codegen_flags: <defaults>
</compile_context>

<pallas_src>
import functools

import jax
import jax.numpy as jnp
from jax.experimental import pallas as pl
from jax.experimental.pallas import tpu as pltpu

LANES = 128  # lane-padded width of the fused (hidden | output) head


def _rnn_seq_kernel(x_ref, h0_ref, wx_ref, wh_ref, b_ref,
                    out_ref, h_out_ref, h_scratch,
                    *, hidden_size, output_size):
    """One RNN timestep; invoked once per grid step t = 0..T-1.

    x_ref    : (1, Bp, I)      input for this timestep (streamed)
    h0_ref   : (Bp, LANES)     initial hidden, lanes [0, H) valid (resident)
    wx_ref   : (I, LANES)      input -> fused-head weight (resident)
    wh_ref   : (LANES, LANES)  hidden -> fused-head weight, rows >= H zero (resident)
    b_ref    : (1, LANES)      fused bias (resident)
    out_ref  : (1, Bp, LANES)  per-step log-probs, lanes [H, H+O) valid (streamed)
    h_out_ref: (Bp, LANES)     final hidden (written on the last step)
    h_scratch: (Bp, LANES)     VMEM hidden-state carry across grid steps
    """
    t = pl.program_id(0)

    @pl.when(t == 0)
    def _():
        h_scratch[...] = h0_ref[...]

    x = x_ref[0]                          # (Bp, I)
    h = h_scratch[...]                    # (Bp, LANES)

    # Fused heads, no lane concat: combined @ [W_i2h.T | W_i2o.T]  ==
    #   x @ Wx + h @ Wh   (Wh rows >= hidden_size are zero, so the non-hidden
    # lanes carried in h_scratch never contribute).
    fused = (jnp.dot(x, wx_ref[...], preferred_element_type=jnp.float32)
             + jnp.dot(h, wh_ref[...], preferred_element_type=jnp.float32)
             + b_ref[...])                # (Bp, LANES)

    # Carry the full fused row as the hidden state (lanes [0, H) are i2h).
    h_scratch[...] = fused

    @pl.when(t == pl.num_programs(0) - 1)
    def _():
        h_out_ref[...] = fused

    # Numerically-stable log_softmax over the output-head lanes [H, H+O).
    lane = jax.lax.broadcasted_iota(jnp.int32, fused.shape, 1)
    is_out = (lane >= hidden_size) & (lane < hidden_size + output_size)
    logits = jnp.where(is_out, fused, jnp.float32(-1e30))
    m = jnp.max(logits, axis=1, keepdims=True)
    lse = jnp.log(jnp.sum(jnp.exp(logits - m), axis=1, keepdims=True))
    out_ref[0] = (logits - m - lse).astype(out_ref.dtype)


def init_params(key, input_size, hidden_size, output_size):
    """PyTorch nn.Linear-style init (uniform +/- 1/sqrt(fan_in)); weights (out, in)."""
    k1, k2, k3, k4 = jax.random.split(key, 4)
    fan_in = input_size + hidden_size
    bound = 1.0 / jnp.sqrt(jnp.float32(fan_in))
    w_i2h = jax.random.uniform(k1, (hidden_size, fan_in), jnp.float32, -bound, bound)
    b_i2h = jax.random.uniform(k2, (hidden_size,), jnp.float32, -bound, bound)
    w_i2o = jax.random.uniform(k3, (output_size, fan_in), jnp.float32, -bound, bound)
    b_i2o = jax.random.uniform(k4, (output_size,), jnp.float32, -bound, bound)
    return w_i2h, b_i2h, w_i2o, b_i2o


def prepare_params(w_i2h, b_i2h, w_i2o, b_i2o):
    """One-time weight prep: fuse both heads into lane-padded (in, out) slabs."""
    hidden_size, fan_in = w_i2h.shape
    output_size = w_i2o.shape[0]
    input_size = fan_in - hidden_size
    assert hidden_size + output_size <= LANES

    # Fused output lanes: [0, H) = i2h head, [H, H+O) = i2o head, rest = 0.
    wf = jnp.zeros((fan_in, LANES), jnp.float32)
    wf = wf.at[:, :hidden_size].set(jnp.asarray(w_i2h, jnp.float32).T)
    wf = wf.at[:, hidden_size:hidden_size + output_size].set(
        jnp.asarray(w_i2o, jnp.float32).T)
    bf = jnp.zeros((1, LANES), jnp.float32)
    bf = bf.at[0, :hidden_size].set(jnp.asarray(b_i2h, jnp.float32))
    bf = bf.at[0, hidden_size:hidden_size + output_size].set(
        jnp.asarray(b_i2o, jnp.float32))

    wx = wf[:input_size, :]                                  # (I, LANES)
    wh = jnp.zeros((LANES, LANES), jnp.float32)
    wh = wh.at[:hidden_size, :].set(wf[input_size:, :])      # rows >= H stay zero

    return dict(wx=wx, wh=wh, b=bf,
                input_size=input_size, hidden_size=hidden_size,
                output_size=output_size)


def rnn_sequence(params, x_seq, h0):
    """Run the RNN cell over a whole sequence inside a single pallas_call.

    x_seq: (T, B, input_size), h0: (B, hidden_size)
    returns (log_probs (T, B, output_size), h_final (B, hidden_size))
    """
    T, B, I = x_seq.shape
    H = params["hidden_size"]
    O = params["output_size"]
    assert I == params["input_size"]

    Bp = ((max(B, 8) + 7) // 8) * 8  # pad batch to the f32 sublane count
    x_p = jnp.zeros((T, Bp, I), jnp.float32).at[:, :B, :].set(
        jnp.asarray(x_seq, jnp.float32))
    h0_p = jnp.zeros((Bp, LANES), jnp.float32).at[:B, :H].set(
        jnp.asarray(h0, jnp.float32))

    kernel = functools.partial(_rnn_seq_kernel, hidden_size=H, output_size=O)

    out_p, h_p = pl.pallas_call(
        kernel,
        out_shape=(
            jax.ShapeDtypeStruct((T, Bp, LANES), jnp.float32),
            jax.ShapeDtypeStruct((Bp, LANES), jnp.float32),
        ),
        grid_spec=pltpu.PrefetchScalarGridSpec(
            num_scalar_prefetch=0,
            grid=(T,),
            in_specs=[
                pl.BlockSpec((1, Bp, I), lambda t: (t, 0, 0)),      # x (streamed)
                pl.BlockSpec((Bp, LANES), lambda t: (0, 0)),        # h0 (resident)
                pl.BlockSpec((I, LANES), lambda t: (0, 0)),         # wx (resident)
                pl.BlockSpec((LANES, LANES), lambda t: (0, 0)),     # wh (resident)
                pl.BlockSpec((1, LANES), lambda t: (0, 0)),         # bias (resident)
            ],
            out_specs=[
                pl.BlockSpec((1, Bp, LANES), lambda t: (t, 0, 0)),  # per-step logp
                pl.BlockSpec((Bp, LANES), lambda t: (0, 0)),        # final hidden
            ],
            scratch_shapes=[pltpu.VMEM((Bp, LANES), jnp.float32)],  # hidden carry
        ),
        compiler_params=pltpu.CompilerParams(
            dimension_semantics=("arbitrary",)),  # time recurrence is sequential
    )(x_p, h0_p, params["wx"], params["wh"], params["b"])

    log_probs = out_p[:, :B, H:H + O]
    h_final = h_p[:B, :H]
    return log_probs, h_final


def rnn_cell(params, x, h):
    """Single-step forward matching RNN.forward(input, hidden)."""
    out_seq, h_new = rnn_sequence(params, x[None], h)
    return out_seq[0], h_new


def _reference_cell(x, h, w_i2h, b_i2h, w_i2o, b_i2o):
    combined = jnp.concatenate([x, h], axis=1)
    h_new = combined @ w_i2h.T + b_i2h
    logits = combined @ w_i2o.T + b_i2o
    return jax.nn.log_softmax(logits, axis=1), h_new


if __name__ == "__main__":
    key = jax.random.PRNGKey(0)
    input_size, hidden_size, output_size = 16, 32, 8
    batch, seq_len = 2, 8

    kp, kx = jax.random.split(key)
    w_i2h, b_i2h, w_i2o, b_i2o = init_params(kp, input_size, hidden_size, output_size)
    params = prepare_params(w_i2h, b_i2h, w_i2o, b_i2o)  # one-time weight prep

    x_seq = jax.random.normal(kx, (seq_len, batch, input_size), jnp.float32)
    h0 = jnp.zeros((batch, hidden_size), jnp.float32)  # initHidden() broadcast to batch

    # Full-sequence kernel (timestep loop lives inside the pallas_call grid).
    out_seq, h_final = rnn_sequence(params, x_seq, h0)
    out_seq = jax.block_until_ready(out_seq)
    h_final = jax.block_until_ready(h_final)

    # Single-step forward (same semantics as the PyTorch module's forward()).
    out_step, h_step = rnn_cell(params, x_seq[0], h0)
    out_step = jax.block_until_ready(out_step)
    h_step = jax.block_until_ready(h_step)

    # Pure-JAX reference (unrolled).
    ref_outs = []
    h_ref = h0
    for t in range(seq_len):
        o, h_ref = _reference_cell(x_seq[t], h_ref, w_i2h, b_i2h, w_i2o, b_i2o)
        ref_outs.append(o)
    ref_out_seq = jnp.stack(ref_outs)

    assert out_seq.shape == (seq_len, batch, output_size)
    assert h_final.shape == (batch, hidden_size)
    assert jnp.allclose(out_seq, ref_out_seq, atol=1e-4, rtol=1e-4)
    assert jnp.allclose(h_final, h_ref, atol=1e-4, rtol=1e-4)
    assert jnp.allclose(out_step, ref_out_seq[0], atol=1e-4, rtol=1e-4)
    assert jnp.allclose(h_step,
                        _reference_cell(x_seq[0], h0, w_i2h, b_i2h, w_i2o, b_i2o)[1],
                        atol=1e-4, rtol=1e-4)

    print("KERNEL_OK")
</pallas_src>

<mosaic_0001>
module attributes {stable_mosaic.version = 11 : i64} {
  func.func @_rnn_seq_kernel(%arg0: i32, %arg1: memref<1x8x16xf32, #tpu.memory_space<vmem>>, %arg2: memref<8x128xf32, #tpu.memory_space<vmem>>, %arg3: memref<16x128xf32, #tpu.memory_space<vmem>>, %arg4: memref<128x128xf32, #tpu.memory_space<vmem>>, %arg5: memref<1x128xf32, #tpu.memory_space<vmem>>, %arg6: memref<1x8x128xf32, #tpu.memory_space<vmem>>, %arg7: memref<8x128xf32, #tpu.memory_space<vmem>>, %arg8: memref<8x128xf32, #tpu.memory_space<vmem>>) attributes {dimension_semantics = [#tpu.dimension_semantics<arbitrary>], iteration_bounds = array<i64: 8>, scalar_prefetch = 0 : i64, scratch_operands = 1 : i64, tpu.core_type = #tpu.core_type<tc>, window_params = [{transform_indices = @transform_0, window_bounds = array<i64: 1, 8, 16>}, {pipeline_mode = #tpu.pipeline_mode<synchronous>, transform_indices = @transform_1, window_bounds = array<i64: 8, 128>}, {pipeline_mode = #tpu.pipeline_mode<synchronous>, transform_indices = @transform_2, window_bounds = array<i64: 16, 128>}, {pipeline_mode = #tpu.pipeline_mode<synchronous>, transform_indices = @transform_3, window_bounds = array<i64: 128, 128>}, {pipeline_mode = #tpu.pipeline_mode<synchronous>, transform_indices = @transform_4, window_bounds = array<i64: 1, 128>}, {transform_indices = @transform_5, window_bounds = array<i64: 1, 8, 128>}, {pipeline_mode = #tpu.pipeline_mode<synchronous>, transform_indices = @transform_6, window_bounds = array<i64: 8, 128>}]} {
    %c0_i32 = arith.constant 0 : i32
    %0 = arith.cmpi eq, %arg0, %c0_i32 : i32
    %1 = arith.extui %0 : i1 to i32
    %c0_i32_0 = arith.constant 0 : i32
    %2 = arith.cmpi ne, %1, %c0_i32_0 : i32
    scf.if %2 {
      %c0_21 = arith.constant 0 : index
      %c0_22 = arith.constant 0 : index
      %41 = vector.load %arg2[%c0_21, %c0_22] : memref<8x128xf32, #tpu.memory_space<vmem>>, vector<8x128xf32>
      %c0_23 = arith.constant 0 : index
      %c0_24 = arith.constant 0 : index
      %42 = vector.load %arg8[%c0_23, %c0_24] : memref<8x128xf32, #tpu.memory_space<vmem>>, vector<8x128xf32>
      tpu.vector_store %arg8[%c0_23, %c0_24], %41 {strides = array<i32>} : memref<8x128xf32, #tpu.memory_space<vmem>>, vector<8x128xf32>,
    } else {
    }
    %c0 = arith.constant 0 : index
    %c0_1 = arith.constant 0 : index
    %c0_2 = arith.constant 0 : index
    %3 = vector.load %arg1[%c0, %c0_1, %c0_2] : memref<1x8x16xf32, #tpu.memory_space<vmem>>, vector<1x8x16xf32>
    %4 = vector.shape_cast %3 : vector<1x8x16xf32> to vector<8x16xf32>
    %c0_3 = arith.constant 0 : index
    %c0_4 = arith.constant 0 : index
    %5 = vector.load %arg8[%c0_3, %c0_4] : memref<8x128xf32, #tpu.memory_space<vmem>>, vector<8x128xf32>
    %c0_5 = arith.constant 0 : index
    %c0_6 = arith.constant 0 : index
    %6 = vector.load %arg3[%c0_5, %c0_6] : memref<16x128xf32, #tpu.memory_space<vmem>>, vector<16x128xf32>
    %cst = arith.constant dense<0.000000e+00> : vector<8x128xf32>
    %7 = tpu.matmul %4, %6, %cst {dimension_numbers = #tpu.dot_dimension_numbers<[1], [0], [0], [1], [0, 0, 1, 1], [], []>} : vector<8x16xf32>, vector<16x128xf32>, vector<8x128xf32> -> vector<8x128xf32>
    %c0_7 = arith.constant 0 : index
    %c0_8 = arith.constant 0 : index
    %8 = vector.load %arg4[%c0_7, %c0_8] : memref<128x128xf32, #tpu.memory_space<vmem>>, vector<128x128xf32>
    %cst_9 = arith.constant dense<0.000000e+00> : vector<8x128xf32>
    %9 = tpu.matmul %5, %8, %cst_9 {dimension_numbers = #tpu.dot_dimension_numbers<[1], [0], [0], [1], [0, 0, 1, 1], [], []>} : vector<8x128xf32>, vector<128x128xf32>, vector<8x128xf32> -> vector<8x128xf32>
    %10 = arith.addf %7, %9 : vector<8x128xf32>
    %c0_10 = arith.constant 0 : index
    %c0_11 = arith.constant 0 : index
    %11 = vector.load %arg5[%c0_10, %c0_11] : memref<1x128xf32, #tpu.memory_space<vmem>>, vector<1x128xf32>
    %12 = vector.broadcast %11 : vector<1x128xf32> to vector<8x128xf32>
    %13 = arith.addf %10, %12 : vector<8x128xf32>
    %c0_12 = arith.constant 0 : index
    %c0_13 = arith.constant 0 : index
    %14 = vector.load %arg8[%c0_12, %c0_13] : memref<8x128xf32, #tpu.memory_space<vmem>>, vector<8x128xf32>
    tpu.vector_store %arg8[%c0_12, %c0_13], %13 {strides = array<i32>} : memref<8x128xf32, #tpu.memory_space<vmem>>, vector<8x128xf32>,
    %c7_i32 = arith.constant 7 : i32
    %15 = arith.cmpi eq, %arg0, %c7_i32 : i32
    %16 = arith.extui %15 : i1 to i32
    %c0_i32_14 = arith.constant 0 : i32
    %17 = arith.cmpi ne, %16, %c0_i32_14 : i32
    scf.if %17 {
      %c0_21 = arith.constant 0 : index
      %c0_22 = arith.constant 0 : index
      %41 = vector.load %arg7[%c0_21, %c0_22] : memref<8x128xf32, #tpu.memory_space<vmem>>, vector<8x128xf32>
      tpu.vector_store %arg7[%c0_21, %c0_22], %13 {strides = array<i32>} : memref<8x128xf32, #tpu.memory_space<vmem>>, vector<8x128xf32>,
    } else {
    }
    %18 = tpu.iota {dimensions = array<i32: 1>} : vector<8x128xi32>
    %c32_i32 = arith.constant 32 : i32
    %19 = vector.broadcast %c32_i32 : i32 to vector<8x128xi32>
    %20 = arith.cmpi sge, %18, %19 : vector<8x128xi32>
    %c40_i32 = arith.constant 40 : i32
    %21 = vector.broadcast %c40_i32 : i32 to vector<8x128xi32>
    %22 = arith.cmpi slt, %18, %21 : vector<8x128xi32>
    %23 = arith.andi %20, %22 : vector<8x128xi1>
    %cst_15 = arith.constant -1.000000e+30 : f32
    %24 = vector.broadcast %cst_15 : f32 to vector<8x128xf32>
    %25 = arith.select %23, %13, %24 : vector<8x128xi1>, vector<8x128xf32>
    %cst_16 = arith.constant dense<0xFF800000> : vector<8xf32>
    %26 = vector.multi_reduction <maximumf>, %25, %cst_16 [1] : vector<8x128xf32> to vector<8xf32>
    %27 = vector.shape_cast %26 : vector<8xf32> to vector<8x1xf32>
    %28 = vector.broadcast %27 : vector<8x1xf32> to vector<8x128xf32>
    %29 = arith.subf %25, %28 : vector<8x128xf32>
    %30 = math.exp %29 : vector<8x128xf32>
    %cst_17 = arith.constant dense<0.000000e+00> : vector<8xf32>
    %31 = vector.multi_reduction <add>, %30, %cst_17 [1] : vector<8x128xf32> to vector<8xf32>
    %32 = vector.shape_cast %31 : vector<8xf32> to vector<8x1xf32>
    %33 = math.log %32 : vector<8x1xf32>
    %34 = vector.broadcast %27 : vector<8x1xf32> to vector<8x128xf32>
    %35 = arith.subf %25, %34 : vector<8x128xf32>
    %36 = vector.broadcast %33 : vector<8x1xf32> to vector<8x128xf32>
    %37 = arith.subf %35, %36 : vector<8x128xf32>
    %c0_18 = arith.constant 0 : index
    %c0_19 = arith.constant 0 : index
    %c0_20 = arith.constant 0 : index
    %38 = vector.load %arg6[%c0_18, %c0_19, %c0_20] : memref<1x8x128xf32, #tpu.memory_space<vmem>>, vector<1x8x128xf32>
    %39 = vector.shape_cast %38 : vector<1x8x128xf32> to vector<8x128xf32>
    %40 = vector.shape_cast %37 : vector<8x128xf32> to vector<1x8x128xf32>
    tpu.vector_store %arg6[%c0_18, %c0_19, %c0_20], %40 {strides = array<i32>} : memref<1x8x128xf32, #tpu.memory_space<vmem>>, vector<1x8x128xf32>,
    return
  }
  func.func @transform_0(%arg0: i32) -> (i32, i32, i32) {
    %c0_i32 = arith.constant 0 : i32
    %c0_i32_0 = arith.constant 0 : i32
    %c0_i32_1 = arith.constant 0 : i32
    return %arg0, %c0_i32, %c0_i32_0 : i32, i32, i32
  }
  func.func @transform_1(%arg0: i32) -> (i32, i32) {
    %c0_i32 = arith.constant 0 : i32
    %c0_i32_0 = arith.constant 0 : i32
    %c0_i32_1 = arith.constant 0 : i32
    return %c0_i32, %c0_i32_0 : i32, i32
  }
  func.func @transform_2(%arg0: i32) -> (i32, i32) {
    %c0_i32 = arith.constant 0 : i32
    %c0_i32_0 = arith.constant 0 : i32
    %c0_i32_1 = arith.constant 0 : i32
    return %c0_i32, %c0_i32_0 : i32, i32
  }
  func.func @transform_3(%arg0: i32) -> (i32, i32) {
    %c0_i32 = arith.constant 0 : i32
    %c0_i32_0 = arith.constant 0 : i32
    %c0_i32_1 = arith.constant 0 : i32
    return %c0_i32, %c0_i32_0 : i32, i32
  }
  func.func @transform_4(%arg0: i32) -> (i32, i32) {
    %c0_i32 = arith.constant 0 : i32
    %c0_i32_0 = arith.constant 0 : i32
    %c0_i32_1 = arith.constant 0 : i32
    return %c0_i32, %c0_i32_0 : i32, i32
  }
  func.func @transform_5(%arg0: i32) -> (i32, i32, i32) {
    %c0_i32 = arith.constant 0 : i32
    %c0_i32_0 = arith.constant 0 : i32
    %c0_i32_1 = arith.constant 0 : i32
    return %arg0, %c0_i32, %c0_i32_0 : i32, i32, i32
  }
  func.func @transform_6(%arg0: i32) -> (i32, i32) {
    %c0_i32 = arith.constant 0 : i32
    %c0_i32_0 = arith.constant 0 : i32
    %c0_i32_1 = arith.constant 0 : i32
    return %c0_i32, %c0_i32_0 : i32, i32
  }
}

</mosaic_0001>

<bundles_post_ra>
// kernel: tpu_custom_call.1
= control target key start
LH: loop header
LB: loop body
LE: loop exit
PB: predicated region body
PF: predicated region fallthrough
CT: control target
= control target key end

     0   :  { %12 = vsyncpa [#allocation4], 0  ;;  %s1397_s0 = inlined_call_operand.hbm [shape: f32[8,8,16], index: 0, kind: input, shape index: {}]   ;;  %s1398_s1 = inlined_call_operand.hbm [shape: f32[8,128], index: 1, kind: input, shape index: {}]   ;;  %s1399_s2 = inlined_call_operand.hbm [shape: f32[16,128], index: 2, kind: input, shape index: {}]   ;;  %s1400_s3 = inlined_call_operand.hbm [shape: f32[128,128], index: 3, kind: input, shape index: {}]   ;;  %s1401_s4 = inlined_call_operand.vmem [shape: f32[1,128], index: 4, kind: input, shape index: {}]   ;;  %s1402_s5 = inlined_call_operand.hbm [shape: f32[8,8,128], index: 5, kind: output, shape index: {0}]   ;;  %s1403_s6 = inlined_call_operand.hbm [shape: f32[8,128], index: 6, kind: output, shape index: {1}]  }
   0x1   :  { %14 = vsyncpa [#allocation4 + $0x1], 0 }
   0x2   :  { %15 = vsyncpa [#allocation7], 0 }
   0x3   :  { %16 = vsyncpa [#allocation10], 0 }
   0x4   :  { %17 = vsyncpa [#allocation5], 0 }
   0x5   :  { %19 = vsyncpa [#allocation5 + $0x1], 0 }
   0x6   :  { %20 = vsyncpa [#allocation13], 0  ;;  %s1116_s21 = smov 0   ;;  %s1118_s22 = smov 0  }
   0x7   :  { %s1120_s23 = smov 0   ;;  %s1122_s24 = smov 0  }
   0x8 LB: > { %s1137_s25 = sadd.s32 4294967295, %s1068_s24   ;;  %s644_s26 = sadd.s32 4294967294, %s1068_s24   ;;  %s1068_s24 = sphi %s1122_s24, %s1430_s24   ;;  %s1064_s23 = sphi %s1120_s23, %s1429_s23   ;;  %s1060_s22 = sphi %s1118_s22, %s1428_s22   ;;  %s1056_s21 = sphi %s1116_s21, %s1427_s21  }
   0x9   : > { %p46_p0 = scmp.ne.s32.totalorder %s1060_s22, %s1056_s21  ;;  %p1404_p1 = scmp.eq.s32.totalorder %s1137_s25, 0 }
   0xa   : > { %p160_p3 = scmp.eq.s32.totalorder %s644_s26, 7  ;;  %p645_p5 = scmp.ge.s32.totalorder %s1068_s24, 1 }
   0xb   : > { %p1146_p4 = por %p1404_p1, %p46_p0  ;;  %p188_p7 = scmp.lt.s32.totalorder %s1068_s24, 9 }
   0xc   : > { %p1151_p6 = por %p160_p3, %p46_p0  ;;  %s1070_s30 = smov [#allocation6]  }
   0xd   : > { %s1407_s27 = scalar_select %p1146_p4, 1, 0 }
   0xe   : > { %s1408_s28 = scalar_select %p1151_p6, 1, 0 }
   0xf   : > { %p1157_p9 = pnand %p645_p5, %p188_p7  ;;  %s201_s7 = sshll.u32 %s1070_s30, 4  ;;  %s202_s7 = int_to_ptr.vmem [resolvable:$true] %s201_s7 }
  0x10   : > { %s1071_s8 = smov [#allocation8]   ;;  %s1072_s11 = smov [#allocation9]  }
  0x11   : > { %s1409_s29 = scalar_select %p1157_p9, 1, 0 }
  0x12   : > { %p777_p10 = pneg %p1157_p9  ;;  %s211_s9 = sshll.u32 %s1071_s8, 4  ;;  %s1169_s9 = int_to_ptr.vmem [resolvable:$true] %s211_s9 }
  0x13   : > { %s1171_s12 = sshll.u32 %s1072_s11, 4  ;;  %s850_s15 = scalar_lea.hbm %s1398_s1, 128  ;;  %s225_s12 = int_to_ptr.vmem [resolvable:$true] %s1171_s12 }
  0x14   : > { %p1165_p11 = pnand %p777_p10, %p1404_p1  ;;  %p851_p12 = scmp.ne.s32.totalorder %s1398_s1, %s850_s15 }
  0x15   : > { %p857_p5 = scmp.lt.u32.totalorder %s850_s15, %s1398_s1 }
  0x16   : > { %p1181_p13 = pneg %p1165_p11 }
  0x18   : > { %p853_p0 = pnand %p1181_p13, %p851_p12 }
  0x1a   : > { %p854_p3 = pneg %p853_p0 }
  0x1c   : > { %p859_p7 = pnand %p857_p5, %p854_p3 }
  0x1e   : > { %862 = shalt.err (!%p859_p7)
}
  0x1f   : > { %s863_s26 = scalar_lea.vmem %s202_s7, 128  ;;  %p871_p2 = scmp.lt.s32.totalorder %s202_s7, %s202_s7 }
  0x20   : > { %p864_p10 = scmp.ne.s32.totalorder %s202_s7, %s863_s26  ;;  %p872_p6 = scmp.lt.s32.totalorder %s863_s26, %s863_s26 }
  0x22   : > { %p866_p8 = pnand %p864_p10, %p1181_p13  ;;  %p873_p4 = por %p872_p6, %p871_p2 }
  0x24   : > { %p867_p1 = pneg %p866_p8 }
  0x26   : > { %p874_p9 = pnand %p873_p4, %p867_p1 }
  0x28   : > { %877 = shalt.err (!%p874_p9)
}
  0x29   : > { %780 = dma.hbm_to_vmem [thread:$0]  (!%p1165_p11), %s1398_s1, 128, %s202_s7, [#allocation7]  }
  0x2a   : > { %s878_s14 = scalar_lea.hbm %s1399_s2, 256 }
  0x2b   : > { %p879_p8 = scmp.ne.s32.totalorder %s1399_s2, %s878_s14  ;;  %p885_p1 = scmp.lt.u32.totalorder %s878_s14, %s1399_s2 }
  0x2d   : > { %p881_p12 = pnand %p879_p8, %p1181_p13 }
  0x2f   : > { %p882_p2 = pneg %p881_p12 }
  0x31   : > { %p887_p4 = pnand %p885_p1, %p882_p2 }
  0x33   : > { %890 = shalt.err (!%p887_p4)
}
  0x34   : > { %s891_s7 = scalar_lea.vmem %s1169_s9, 256  ;;  %p899_p3 = scmp.lt.s32.totalorder %s1169_s9, %s1169_s9 }
  0x35   : > { %p892_p6 = scmp.ne.s32.totalorder %s1169_s9, %s891_s7  ;;  %p900_p5 = scmp.lt.s32.totalorder %s891_s7, %s891_s7 }
  0x37   : > { %p894_p9 = pnand %p892_p6, %p1181_p13  ;;  %p901_p7 = por %p900_p5, %p899_p3 }
  0x39   : > { %p895_p0 = pneg %p894_p9 }
  0x3b   : > { %p902_p10 = pnand %p901_p7, %p895_p0 }
  0x3d   : > { %905 = shalt.err (!%p902_p10)
}
  0x3e   : > { %s1073_s20 = smov 128   ;;  %s1074_s26 = smov 8  }
  0x3f   : > { %783 = dma.hbm_to_vmem [thread:$0]  (!%p1165_p11), %s1399_s2, 256, %s1169_s9, [#allocation7], %s1073_s20, %s1073_s20, %s1074_s26  }
  0x40   : > { %s906_s14 = scalar_lea.hbm %s1400_s3, 2048 }
  0x41   : > { %p907_p8 = scmp.ne.s32.totalorder %s1400_s3, %s906_s14  ;;  %p913_p1 = scmp.lt.u32.totalorder %s906_s14, %s1400_s3 }
  0x43   : > { %p909_p12 = pnand %p907_p8, %p1181_p13 }
  0x45   : > { %p910_p2 = pneg %p909_p12 }
  0x47   : > { %p915_p4 = pnand %p913_p1, %p910_p2 }
  0x49   : > { %918 = shalt.err (!%p915_p4)
}
  0x4a   : > { %s919_s7 = scalar_lea.vmem %s225_s12, 2048  ;;  %p927_p3 = scmp.lt.s32.totalorder %s225_s12, %s225_s12 }
  0x4b   : > { %p920_p6 = scmp.ne.s32.totalorder %s225_s12, %s919_s7  ;;  %p928_p5 = scmp.lt.s32.totalorder %s919_s7, %s919_s7 }
  0x4d   : > { %p922_p9 = pnand %p920_p6, %p1181_p13  ;;  %p929_p7 = por %p928_p5, %p927_p3 }
  0x4f   : > { %p923_p0 = pneg %p922_p9 }
  0x51   : > { %p930_p10 = pnand %p929_p7, %p923_p0 }
  0x53   : > { %933 = shalt.err (!%p930_p10)
}
  0x54   : > { %786 = dma.hbm_to_vmem [thread:$0]  (!%p1165_p11), %s1400_s3, 2048, %s225_s12, [#allocation10], %s1073_s20, %s1073_s20, %s1074_s26  }
  0x55   : > { %s1240_s18 = sadd.s32 1, %s1068_s24   ;;  %s33_s10 = sadd.s32 1, %s1064_s23 }
  0x56   : > { %s30_s8 = ssub.s32 %s1068_s24, %s1240_s18  ;;  %p40_p8 = scmp.ne.s32.totalorder %s1064_s23, %s1060_s22 }
  0x57   : > { %p31_p13 = scmp.eq.s32.totalorder %s30_s8, 0  ;;  %p41_p12 = scmp.eq.s32.totalorder %s1068_s24, 0 }
  0x58   : > { %p798_p2 = scmp.lt.s32.totalorder %s1068_s24, 8  ;;  %p1412_p4 = scmp.eq.s32.totalorder %s1137_s25, 7 }
  0x59   : > { %s1250_s11 = scalar_select %p31_p13, %s1064_s23, %s33_s10  }
  0x5a   : > { %p42_p1 = por %p41_p12, %p40_p8  ;;  %p1254_p6 = por %p1412_p4, %p40_p8 }
  0x5b   : > { %s241_s14 = sand.u32 1, %s1064_s23   ;;  %s651_s15 = sshll.u32 %s1068_s24, 7 }
  0x5c   : > { %s650_s12 = sshll.u32 %s241_s14, 3  ;;  %s1263_s16 = scalar_lea.hbm %s1397_s0, %s651_s15 }
  0x5d   : > { %s245_s17 = scalar_lea.vmem [#allocation3], %s650_s12  ;;  %p1265_p11 = pnand %p798_p2, %p42_p1 }
  0x5e   : > { %s252_s19 = sshll.u32 %s245_s17, 4  ;;  %s242_s9 = scalar_lea.sflag [#allocation4], %s241_s14  ;;  %s1269_s19 = int_to_ptr.vmem [resolvable:$true] %s252_s19 }
  0x5f   : > { %s934_s30 = scalar_lea.hbm %s1263_s16, 128  ;;  %p936_p0 = pneg %p1265_p11 }
  0x60   : > { %p935_p9 = scmp.ne.s32.totalorder %s1263_s16, %s934_s30  ;;  %s939_s15 = scalar_lea.hbm %s1397_s0, 1024 }
  0x61   : > { %p940_p7 = scmp.lt.u32.totalorder %s1263_s16, %s1397_s0  ;;  %p941_p10 = scmp.lt.u32.totalorder %s939_s15, %s934_s30 }
  0x62   : > { %p937_p3 = pnand %p936_p0, %p935_p9  ;;  %p943_p8 = scmp.lt.u32.totalorder %s934_s30, %s1263_s16 }
  0x63   : > { %p942_p13 = por %p941_p10, %p940_p7 }
  0x64   : > { %p938_p5 = pneg %p937_p3 }
  0x65   : > { %p944_p12 = por %p943_p8, %p942_p13 }
  0x67   : > { %p945_p2 = pnand %p944_p12, %p938_p5 }
  0x69   : > { %948 = shalt.err (!%p945_p2)
}
  0x6a   : > { %s949_s14 = scalar_lea.vmem %s1269_s19, 128  ;;  %s1075_s26 = smov [#allocation3]  }
  0x6b   : > { %p950_p1 = scmp.ne.s32.totalorder %s1269_s19, %s949_s14  ;;  %s954_s17 = sshll.u32 %s1075_s26, 4  ;;  %s955_s17 = int_to_ptr.vmem [resolvable:$false] %s954_s17 }
  0x6c   : > { %s956_s8 = scalar_lea.vmem %s955_s17, 256  ;;  %p957_p3 = scmp.lt.s32.totalorder %s1269_s19, %s955_s17 }
  0x6d   : > { %p952_p4 = pnand %p950_p1, %p936_p0  ;;  %p958_p7 = scmp.lt.s32.totalorder %s956_s8, %s949_s14 }
  0x6f   : > { %p953_p9 = pneg %p952_p4  ;;  %p959_p10 = por %p958_p7, %p957_p3 }
  0x71   : > { %p960_p13 = pnand %p959_p10, %p953_p9 }
  0x73   : > { %963 = shalt.err (!%p960_p13)
}
  0x74   : > { %790 = dma.hbm_to_vmem [thread:$0]  (!%p1265_p11), %s1263_s16, 128, %s1269_s19, %s242_s9  }
  0x75   : > { %p1415_p5 = scmp.ne.s32.totalorder %s1409_s29, 0 }
  0x76   : > { %s1299_s30 = sand.u32 (!%p1415_p5), 1, %s1060_s22   ;;  %p1416_p0 = scmp.ne.s32.totalorder (!%p1415_p5), %s1407_s27, 0 }
  0x77   : > { %261 = sbr.rel (%p1415_p5) target bundleno = 734 (0x2de), region = 40  ;;  %s653_s10 = sshll.u32 (!%p1415_p5), %s1299_s30, 3 }
  0x78   : > { %s264_s15 = scalar_lea.sflag (!%p1415_p5), [#allocation4], %s1299_s30  ;;  %s1303_s12 = scalar_lea.vmem (!%p1415_p5), [#allocation3], %s653_s10 }
  0x7e   : > { %1035 = dma.done.wait (%p1416_p0), %s264_s15, 128  }
  0x7f   : > { %1037 = vsyncadd (%p1416_p0), %s264_s15, 4294967168  ;;  %p1417_p11 = scmp.eq.s32.totalorder %s1137_s25, 0 }
  0x81   : > { %1039 = dma.done.wait (%p1417_p11), [#allocation7], 384   ;;  %p1418_p8 = pmov %p1417_p11 }
  0x83   : > { %1041 = vsyncadd (%p1418_p8), [#allocation7], 4294966912  ;;  %p1419_p12 = pmov %p1418_p8 }
  0x84   : > { %p1420_p2 = pmov %p1418_p8 }
  0x85   : > { %1043 = dma.done.wait (%p1419_p12), [#allocation10], 2048  }
  0x86   : > { %1045 = vsyncadd (%p1420_p2), [#allocation10], 4294965248  ;;  %s1317_s29 = scalar_lea.vmem [#allocation11], %s653_s10  ;;  %p1421_p1 = scmp.ne.s32.totalorder %s1137_s25, 0 }
  0x87   : > { %v312_v0 = vld [vmem:[#allocation6] sm:$0xff] (!%p1421_p1) }
  0x88   : > { %311 = sbr.rel (%p1421_p1) target bundleno = 143 (0x8f), region = 60  ;;  %313 = vst [vmem:[#allocation2] sm:$0xff] (!%p1421_p1), %v312_v0 }
  0x8f PF: > { %v318_v1 = vld [vmem:[#allocation9] sm:$0xff]  ;;  %v319_v2 = vld [vmem:[#allocation9 + $0x8] sm:$0xff]  ;;  %v320_v3 = vld [vmem:[#allocation9 + $0x10] sm:$0xff]  ;;  %v1076_v4 = vmov 0.0|0.0   ;;  %vm1077_vm0 = vmmov 0   ;;  %v1078_v7 = vmov 0.0  }
  0x90   : > { %730 = vmatprep.subr.bf16.mxu0 %v1076_v4  ;;  %v731_v5 = vpack.c.bf16 %v319_v2, %v318_v1  ;;  %v321_v6 = vld [vmem:[#allocation9 + $0x18] sm:$0xff]  ;;  %754 = vmatprep.subr.bf16.mxu1 %v1076_v4  ;;  %v322_v9 = vld [vmem:[#allocation9 + $0x20] sm:$0xff]  ;;  %v323_v10 = vld [vmem:[#allocation9 + $0x28] sm:$0xff]  ;;  %vm404_vm1 = vcmask 130048   ;;  %p661_p4 = scmp.ne.s32.totalorder %s1137_s25, 7 }
  0x91   : > { %727 = vmatprep.mubr.msk.f32.mxu1 %vm1077_vm0, %v1078_v7  ;;  %720 = vmatprep.mubr.msk.f32.mxu0 %vm1077_vm0, %v1078_v7  ;;  %v734_v8 = vpack.c.bf16 %v321_v6, %v320_v3  ;;  %v316_v11 = vld [vmem:[#allocation8] sm:$0xff]  ;;  %v317_v12 = vld [vmem:[#allocation8 + $0x8] sm:$0xff]  ;;  %v737_v14 = vpack.c.bf16 %v323_v10, %v322_v9  ;;  %v326_v19 = vld [vmem:[#allocation9 + $0x40] sm:$0xff] }
  0x92   : > { %732 = vmatpush3.bf16.msra.mxu0 %v731_v5  ;;  %v755_v13 = vpack.c.bf16 %v317_v12, %v316_v11  ;;  %v324_v15 = vld [vmem:[#allocation9 + $0x30] sm:$0xff]  ;;  %v325_v16 = vld [vmem:[#allocation9 + $0x38] sm:$0xff]  ;;  %v327_v20 = vld [vmem:[#allocation9 + $0x48] sm:$0xff] }
  0x93   : > { %733 = vmatprep.subr.bf16.mxu0 %v1076_v4  ;;  %v314_v17 = vld [vmem:[%s1303_s12] sm:$0xff]  ;;  %v740_v18 = vpack.c.bf16 %v325_v16, %v324_v15  ;;  %v743_v21 = vpack.c.bf16 %v327_v20, %v326_v19  ;;  %v328_v22 = vld [vmem:[#allocation9 + $0x50] sm:$0xff]  ;;  %v331_v26 = vld [vmem:[#allocation9 + $0x68] sm:$0xff] }
  0x94   : > { %756 = vmatpush3.bf16.msra.mxu1 %v755_v13  ;;  %v329_v23 = vld [vmem:[#allocation9 + $0x58] sm:$0xff]  ;;  %v330_v25 = vld [vmem:[#allocation9 + $0x60] sm:$0xff]  ;;  %v332_v28 = vld [vmem:[#allocation9 + $0x70] sm:$0xff] }
  0x95   : > { %v746_v24 = vpack.c.bf16 %v329_v23, %v328_v22  ;;  %v749_v27 = vpack.c.bf16 %v331_v26, %v330_v25  ;;  %v333_v29 = vld [vmem:[#allocation9 + $0x78] sm:$0xff]  ;;  %v315_v31 = vld [vmem:[#allocation2] sm:$0xff] }
  0x96   : > { %735 = vmatpush3.bf16.msra.mxu0 %v734_v8  ;;  %v752_v30 = vpack.c.bf16 %v333_v29, %v332_v28  ;;  %v660_v35 = vld [vmem:[%s1401_s4] ss:$0 sm:$0xff] }
  0x97   : > { %736 = vmatprep.subr.bf16.mxu0 %v1076_v4  ;;  %728 = vmatmul.mubr.msk.f32.vlgmr.msra.gmra.mrb[0].mxu1 %vm404_vm1, %v314_v17 }
  0x9a   : > { %738 = vmatpush3.bf16.msra.mxu0 %v737_v14 }
  0x9b   : > { %739 = vmatprep.subr.bf16.mxu0 %v1076_v4 }
  0x9e   : > { %741 = vmatpush3.bf16.msra.mxu0 %v740_v18 }
  0x9f   : > { %742 = vmatprep.subr.bf16.mxu0 %v1076_v4 }
  0xa2   : > { %744 = vmatpush3.bf16.msra.mxu0 %v743_v21 }
  0xa3   : > { %745 = vmatprep.subr.bf16.mxu0 %v1076_v4 }
  0xa6   : > { %747 = vmatpush3.bf16.msra.mxu0 %v746_v24 }
  0xa7   : > { %748 = vmatprep.subr.bf16.mxu0 %v1076_v4 }
  0xaa   : > { %750 = vmatpush3.bf16.msra.mxu0 %v749_v27 }
  0xab   : > { %751 = vmatprep.subr.bf16.mxu0 %v1076_v4 }
  0xae   : > { %753 = vmatpush3.bf16.msra.mxu0 %v752_v30 }
  0xb1   : > { %721 = vmatmul.mubr.f32.vlgmr.msra.gmra.mrb[0].mxu0 %v315_v31 }
 0x16a   : > { %v474_v32 = vpop.f32.mrb[0].mxu1 }
 0x16b   : > { %v729_v33 = vpop.f32.mrb[1].mxu1 }
 0x183   : > { %490 = sbr.rel (%p661_p4) target bundleno = 394 (0x18a), region = 64 }
 0x184   : > { %v400_v34 = vpop.f32.mrb[0].mxu0 }
 0x185   : > { %v475_v36 = vadd.f32 %v474_v32, %v400_v34  ;;  %v722_v37 = vpop.f32.mrb[1].mxu0 }
 0x187   : > { %v485_v38 = vadd.f32 %v660_v35, %v475_v36 }
 0x189   : > { %486 = vst [vmem:[#allocation2] sm:$0xff] %v485_v38  ;;  %491 = vst [vmem:[#allocation12] sm:$0xff] (!%p661_p4), %v485_v38 }
 0x18a PF: > { %v492_v39 = vlaneseq  ;;  %s1079_s19 = smov [#allocation12]   ;;  %p1422_p3 = scmp.eq.s32.totalorder %s1137_s25, 7 }
 0x18b   : > { %s534_s7 = sshll.u32 %s1079_s19, 4  ;;  %s535_s7 = int_to_ptr.vmem [resolvable:$true] %s534_s7 }
 0x18c   : > { %v493_v40 = vand.u32 127, %v492_v39  ;;  %s964_s9 = scalar_lea.vmem %s535_s7, 128  ;;  %p971_p13 = scmp.lt.s32.totalorder %s535_s7, %s535_s7 }
 0x18d   : > { %p965_p9 = scmp.ne.s32.totalorder %s535_s7, %s964_s9  ;;  %p972_p5 = scmp.lt.s32.totalorder %s964_s9, %s964_s9 }
 0x18e   : > { %vm494_vm2 = vcmp.ge.s32.totalorder %v493_v40, 32  ;;  %vm495_vm3 = vcmp.lt.s32.totalorder %v493_v40, 40 }
 0x18f   : > { %vm496_vm4 = vmand %vm494_vm2, %vm495_vm3  ;;  %p966_p7 = pnand %p965_p9, %p1422_p3  ;;  %p973_p0 = por %p972_p5, %p971_p13 }
 0x190   : > { %v497_v41 = vsel %vm496_vm4, %v485_v38, -1e+30 }
 0x191   : > { %498 = vmax.xlane.f32.xlu0 %v497_v41  ;;  %p967_p10 = pneg %p966_p7 }
 0x193   : > { %p974_p11 = pnand %p973_p0, %p967_p10 }
 0x21e   : > { %v499_v42 = vpop.xlane.xlu0 %498 }
 0x21f   : > { %v500_v43 = vsub.f32 %v497_v41, %v499_v42 }
 0x221   : > { %v501_v44 = vmul.f32 1.442695, %v500_v43 }
 0x223   : > { %846 = vpow2.f32 %v501_v44 }
 0x22d   : > { %v847_v45 = vpop.eup %846 }
 0x22e   : > { %503 = vadd.xlane.f32.xlu0 %v847_v45 }
 0x22f   : > { %977 = shalt.err (!%p974_p11)
}
 0x230   : > { %s978_s26 = scalar_lea.hbm %s1403_s6, 128  ;;  %p1423_p12 = pmov %p1422_p3 }
 0x231   : > { %p979_p8 = scmp.ne.s32.totalorder %s1403_s6, %s978_s26  ;;  %p984_p4 = scmp.lt.u32.totalorder %s978_s26, %s1403_s6 }
 0x233   : > { %p980_p2 = pnand %p979_p8, %p1423_p12 }
 0x235   : > { %p981_p1 = pneg %p980_p2 }
 0x237   : > { %p986_p9 = pnand %p984_p4, %p981_p1 }
 0x239   : > { %989 = shalt.err (!%p986_p9)
}
 0x23a   : > { %773 = dma.vmem_to_hbm [thread:$0]  (%p1422_p3), %s535_s7, 128, %s1403_s6, [#allocation13]  }
 0x23b   : > { %s663_s16 = sshll.u32 %s1137_s25, 7  ;;  %s523_s19 = sshll.u32 %s1317_s29, 4  ;;  %s1351_s19 = int_to_ptr.vmem [resolvable:$true] %s523_s19 }
 0x23c   : > { %s1349_s14 = scalar_lea.hbm %s1402_s5, %s663_s16  ;;  %s510_s26 = scalar_lea.sflag [#allocation5], %s1299_s30 }
 0x23d   : > { %s990_s7 = scalar_lea.vmem %s1351_s19, 128  ;;  %s1080_s17 = smov [#allocation11]  }
 0x23e   : > { %p991_p7 = scmp.ne.s32.totalorder %s1351_s19, %s990_s7  ;;  %s994_s8 = sshll.u32 %s1080_s17, 4  ;;  %s995_s8 = int_to_ptr.vmem [resolvable:$false] %s994_s8 }
 0x23f   : > { %s996_s10 = scalar_lea.vmem %s995_s8, 256  ;;  %p997_p5 = scmp.lt.s32.totalorder %s1351_s19, %s995_s8 }
 0x240   : > { %p992_p10 = pnand %p991_p7, %p1254_p6  ;;  %p998_p0 = scmp.lt.s32.totalorder %s996_s10, %s990_s7 }
 0x242   : > { %p993_p13 = pneg %p992_p10  ;;  %p999_p11 = por %p998_p0, %p997_p5 }
 0x244   : > { %p1000_p8 = pnand %p999_p11, %p993_p13 }
 0x2bb   : > { %v504_v46 = vpop.xlane.xlu0 %503 }
 0x2bc   : > { %848 = vlog2.f32 %v504_v46 }
 0x2c6   : > { %v849_v47 = vpop.eup %848 }
 0x2c7   : > { %v506_v48 = vmul.f32 0.6931472, %v849_v47 }
 0x2c9   : > { %v507_v49 = vsub.f32 %v500_v43, %v506_v48 }
 0x2cb   : > { %508 = vst [vmem:[%s1317_s29] sm:$0xff] %v507_v49 }
 0x2cc   : > { %1003 = shalt.err (!%p1000_p8)
}
 0x2cd   : > { %s1004_s30 = scalar_lea.hbm %s1349_s14, 128  ;;  %s1008_s12 = scalar_lea.hbm %s1402_s5, 1024 }
 0x2ce   : > { %p1005_p12 = scmp.ne.s32.totalorder %s1349_s14, %s1004_s30  ;;  %p1009_p4 = scmp.lt.u32.totalorder %s1349_s14, %s1402_s5 }
 0x2cf   : > { %p1010_p9 = scmp.lt.u32.totalorder %s1008_s12, %s1004_s30  ;;  %p1012_p7 = scmp.lt.u32.totalorder %s1004_s30, %s1349_s14 }
 0x2d0   : > { %p1006_p2 = pnand %p1005_p12, %p1254_p6 }
 0x2d1   : > { %p1011_p3 = por %p1010_p9, %p1009_p4 }
 0x2d2   : > { %p1007_p1 = pneg %p1006_p2 }
 0x2d3   : > { %p1013_p10 = por %p1012_p7, %p1011_p3 }
 0x2d5   : > { %p1014_p13 = pnand %p1013_p10, %p1007_p1 }
 0x2d7   : > { %1017 = shalt.err (!%p1014_p13)
}
 0x2d8   : > { %771 = dma.vmem_to_hbm [thread:$0]  (%p1254_p6), %s1351_s19, 128, %s1349_s14, %s510_s26  }
 0x2d9   : > { %p1424_p5 = scmp.eq.s32.totalorder %s1137_s25, 7 }
 0x2db   : > { %1047 = dma.done.wait (%p1424_p5), [#allocation13], 128   ;;  %p1425_p0 = pmov %p1424_p5 }
 0x2dd   : > { %1049 = vsyncadd (%p1425_p0), [#allocation13], 4294967168 }
 0x2de PF: > { %p804_p11 = scmp.ge.s32.totalorder %s1068_s24, 2  ;;  %s550_s9 = sand.u32 1, %s1056_s21  }
 0x2df   : > { %p1426_p8 = scmp.ne.s32.totalorder %s1408_s28, 0  ;;  %s551_s20 = scalar_lea.sflag [#allocation5], %s550_s9 }
 0x2e1   : > { %p792_p12 = pnand %p804_p11, %p1426_p8 }
 0x2e3   : > { %1051 = dma.done.wait (!%p792_p12), %s551_s20, 128  }
 0x2e4   : > { %1053 = vsyncadd (!%p792_p12), %s551_s20, 4294967168  ;;  %p23_p6 = scmp.ge.s32.totalorder %s1240_s18, 10   ;;  %s1427_s21 = smov %s1060_s22 }
 0x2e5   : > { %s1428_s22 = smov %s1064_s23  ;;  %s1429_s23 = smov %s1250_s11 }
 0x2e6   : > { %s1430_s24 = smov %s1240_s18  ;;  %25 = sbr.rel (!%p23_p6) target bundleno = 8 (0x8), region = 113 }
 0x2ed   :  { %556 = vsyncpa [#allocation4], 1 }
 0x2ee   :  { %558 = vsyncpa [#allocation4 + $0x1], 1 }
 0x2ef   :  { %559 = vsyncpa [#allocation7], 1 }
 0x2f0   :  { %560 = vsyncpa [#allocation10], 1 }
 0x2f1   :  { %561 = vsyncpa [#allocation5], 1 }
 0x2f2   :  { %563 = vsyncpa [#allocation5 + $0x1], 1 }
 0x2f3   :  { %564 = vsyncpa [#allocation13], 1 }

</bundles_post_ra>
